<compile_context>
chip_gen: v7x
topology: tpu7x:2x2x1
jax: 0.10.0
libtpu: 0.0.40
codegen_flags: <defaults>
</compile_context>

<pallas_src>
import math
import jax
import jax.numpy as jnp
from jax.experimental import pallas as pl
from jax.experimental.pallas import tpu as pltpu

_MiB = 1024 * 1024


def _round_up(x, m):
    return ((x + m - 1) // m) * m


def _sublane(dtype):
    # Minimum second-to-last block dim: 8 (f32), 16 (bf16), 32 (int8/fp8).
    return max(8, 32 // jnp.dtype(dtype).itemsize)


def _vmem_budget_and_limit():
    """Generation-aware (working-set budget, Mosaic vmem_limit_bytes)."""
    try:
        cap = int(pltpu.get_tpu_info().vmem_capacity_bytes)
    except Exception:
        cap = 64 * _MiB  # conservative: v7x per-TensorCore VMEM
    if cap >= 96 * _MiB:
        # v5e / v6e: 128 MiB physical VMEM.
        return 96 * _MiB, min(cap - 16 * _MiB, 112 * _MiB)
    # v7x (64 MiB per TC): never hand Mosaic the full physical VMEM.
    return (cap * 5) // 8, (cap * 13) // 16


def _proj_kernel(x_ref, w_ref, b_ref, o_ref):
    # x_ref: (tm, K), w_ref: (K, tn), b_ref: (1, tn), o_ref: (tm, tn)
    acc = jnp.dot(x_ref[...], w_ref[...], preferred_element_type=jnp.float32)
    o_ref[...] = (acc + b_ref[...].astype(jnp.float32)).astype(o_ref.dtype)


def _choose_tn(K, vocab, x_bytes, w_bytes, o_bytes, budget):
    """Pick (tn, N_pad): lane-dense, 256-aligned when possible, budgeted with
    the weight/bias blocks counted once (resident across the inner M sweep)."""
    tm_plan = 256

    def vmem(tn):
        return (2 * tm_plan * K * x_bytes      # x tile, double-buffered
                + K * tn * w_bytes             # weight tile, resident (1x)
                + tn * w_bytes                 # bias tile, resident (1x)
                + 2 * tm_plan * tn * o_bytes   # out tile, double-buffered
                + tm_plan * tn * 4)            # f32 accumulator / bias-add temp

    N0 = _round_up(vocab, 128)
    cap_n = min(N0, 4096)

    def best(aligns, need_divisor):
        for align in aligns:
            tn = cap_n - cap_n % align
            while tn >= align:
                if (not need_divisor or N0 % tn == 0) and vmem(tn) <= budget:
                    return tn
                tn -= align
        return 0

    tn_div = best((256, 128), True)            # no extra padding / no slice
    tn_free = best((256, 128), False) or 128   # allow padding N up to tn

    if tn_div >= max(tn_free // 2, 128):
        return tn_div, N0
    return tn_free, _round_up(vocab, tn_free)


def _choose_tm(K, tn, M, x_bytes, w_bytes, o_bytes, sl, budget):
    """Give the remaining VMEM budget to tm; if the whole (sublane-rounded) M
    fits, use a single resident x block (no x re-streaming at all)."""
    denom = 2 * K * x_bytes + 2 * tn * o_bytes + tn * 4
    avail = budget - K * tn * w_bytes - tn * w_bytes
    tm_max = sl if avail <= 0 else max(sl, (avail // denom) // sl * sl)
    m_rounded = _round_up(M, sl)
    if m_rounded <= tm_max:
        return m_rounded
    tm = min(tm_max, 2048)
    if tm >= 128:
        tm = tm // 128 * 128   # MXU-friendly row tile
    return max(sl, tm)


def make_projection(weight_t, bias, *, out_dtype=None, x_dtype=None):
    """Builds y = x @ weight_t + bias (== torch nn.Linear(d_model, vocab_size)).

    weight_t: (d_model, vocab_size) == torch weight.T
    bias:     (vocab_size,)
    x_dtype:  optional activation dtype used for tile planning (defaults to a
              conservative 4-byte assumption; tm is re-derived per call with
              the real x dtype).
    """
    K, vocab = weight_t.shape
    out_dtype = jnp.dtype(out_dtype or weight_t.dtype)
    w_bytes = jnp.dtype(weight_t.dtype).itemsize
    o_bytes = out_dtype.itemsize
    plan_x_bytes = jnp.dtype(x_dtype).itemsize if x_dtype is not None else 4

    budget, vmem_limit = _vmem_budget_and_limit()
    tn, N_pad = _choose_tn(K, vocab, plan_x_bytes, w_bytes, o_bytes, budget)

    # Parameter-side padding done ONCE, hoisted out of the per-call hot path.
    w = weight_t if N_pad == vocab else jnp.pad(weight_t, ((0, 0), (0, N_pad - vocab)))
    b2 = bias.reshape(1, vocab)
    if N_pad != vocab:
        b2 = jnp.pad(b2, ((0, 0), (0, N_pad - vocab)))

    state = {"resident_ok": True}

    def _build(tm, M_pad, cost, resident):
        if resident:
            # Weight/bias block index is constant across the inner M sweep:
            # single-buffer them so they don't pay a 2x VMEM footprint.
            w_spec = pl.BlockSpec((K, tn), lambda j, i: (0, j),
                                  pipeline_mode=pl.Buffered(1))
            b_spec = pl.BlockSpec((1, tn), lambda j, i: (0, j),
                                  pipeline_mode=pl.Buffered(1))
        else:
            w_spec = pl.BlockSpec((K, tn), lambda j, i: (0, j))
            b_spec = pl.BlockSpec((1, tn), lambda j, i: (0, j))
        return pl.pallas_call(
            _proj_kernel,
            out_shape=jax.ShapeDtypeStruct((M_pad, N_pad), out_dtype),
            grid_spec=pltpu.PrefetchScalarGridSpec(
                num_scalar_prefetch=0,
                grid=(N_pad // tn, M_pad // tm),   # vocab OUTER, M INNER
                in_specs=[
                    pl.BlockSpec((tm, K), lambda j, i: (i, 0)),  # x tile (full K)
                    w_spec,                                      # weight tile
                    b_spec,                                      # bias tile
                ],
                out_specs=pl.BlockSpec((tm, tn), lambda j, i: (i, j)),
            ),
            compiler_params=pltpu.CompilerParams(
                # Vocab axis parallel: the two v7x TensorCores split vocab while
                # each keeps its (K, tn) weight tile resident across its
                # sequential ("arbitrary") M sweep.
                dimension_semantics=("parallel", "arbitrary"),
                vmem_limit_bytes=vmem_limit,
            ),
            cost_estimate=cost,
        )

    def project(x):
        batch, seq, d_model = x.shape
        assert d_model == K, "d_model mismatch between x and weight"
        M = batch * seq
        x_bytes = jnp.dtype(x.dtype).itemsize
        sl = max(_sublane(x.dtype), _sublane(out_dtype))
        tm = _choose_tm(K, tn, M, x_bytes, w_bytes, o_bytes, sl, budget)
        M_pad = _round_up(M, tm)

        x2d = x.reshape(M, d_model)
        if M_pad != M:
            x2d = jnp.pad(x2d, ((0, M_pad - M), (0, 0)))

        cost = pl.CostEstimate(
            flops=2 * M_pad * K * N_pad,
            transcendentals=0,
            bytes_accessed=(K * N_pad * w_bytes + N_pad * w_bytes
                            + (N_pad // tn) * M_pad * K * x_bytes
                            + M_pad * N_pad * o_bytes),
        )

        if state["resident_ok"]:
            try:
                out = _build(tm, M_pad, cost, resident=True)(x2d, w, b2)
            except Exception:
                # TODO(synk): pl.Buffered(1) rejected by this jax/Mosaic version;
                # fall back to default double-buffered weight/bias blocks.
                state["resident_ok"] = False
                out = _build(tm, M_pad, cost, resident=False)(x2d, w, b2)
        else:
            out = _build(tm, M_pad, cost, resident=False)(x2d, w, b2)

        if M_pad != M or N_pad != vocab:
            out = out[:M, :vocab]
        return out.reshape(batch, seq, vocab)

    return project


def init_projection_params(key, d_model, vocab_size, dtype=jnp.float32):
    """Deterministic init mimicking nn.Linear defaults (uniform +/- 1/sqrt(fan_in))."""
    kw, kb = jax.random.split(key)
    bound = 1.0 / math.sqrt(d_model)
    # Torch weight is (vocab, d_model); store transposed (d_model, vocab) for the kernel.
    weight_t = jax.random.uniform(kw, (d_model, vocab_size), dtype, -bound, bound)
    bias = jax.random.uniform(kb, (vocab_size,), dtype, -bound, bound)
    return weight_t, bias


if __name__ == "__main__":
    key = jax.random.PRNGKey(0)
    k_x1, k_p1, k_x2, k_p2 = jax.random.split(key, 4)

    # Case 1: aligned shapes (no padding, no post-kernel slice).
    batch, seq, d_model, vocab_size = 2, 8, 32, 128
    x = jax.random.normal(k_x1, (batch, seq, d_model), dtype=jnp.float32)
    weight_t, bias = init_projection_params(k_p1, d_model, vocab_size)
    project = make_projection(weight_t, bias)
    y = jax.block_until_ready(project(x))
    y_ref = (x.reshape(-1, d_model) @ weight_t + bias).reshape(batch, seq, vocab_size)
    assert y.shape == (batch, seq, vocab_size)
    assert jnp.allclose(y, y_ref, atol=1e-4, rtol=1e-4)

    # Case 2: unaligned M / vocab (exercises the padding + slice path).
    batch2, seq2, d_model2, vocab2 = 2, 7, 48, 100
    x2 = jax.random.normal(k_x2, (batch2, seq2, d_model2), dtype=jnp.float32)
    w2, b2 = init_projection_params(k_p2, d_model2, vocab2)
    project2 = make_projection(w2, b2)
    y2 = jax.block_until_ready(project2(x2))
    y2_ref = (x2.reshape(-1, d_model2) @ w2 + b2).reshape(batch2, seq2, vocab2)
    assert y2.shape == (batch2, seq2, vocab2)
    assert jnp.allclose(y2, y2_ref, atol=1e-4, rtol=1e-4)

    print("KERNEL_OK")
</pallas_src>

<mosaic_0001>
module attributes {stable_mosaic.version = 11 : i64} {
  func.func @_proj_kernel(%arg0: i32, %arg1: i32, %arg2: memref<16x32xf32, #tpu.memory_space<vmem>>, %arg3: memref<32x128xf32, #tpu.memory_space<vmem>>, %arg4: memref<1x128xf32, #tpu.memory_space<vmem>>, %arg5: memref<16x128xf32, #tpu.memory_space<vmem>>) attributes {dimension_semantics = [#tpu.dimension_semantics<parallel>, #tpu.dimension_semantics<arbitrary>], iteration_bounds = array<i64: 1, 1>, scalar_prefetch = 0 : i64, scratch_operands = 0 : i64, tpu.core_type = #tpu.core_type<tc>, window_params = [{transform_indices = @transform_0, window_bounds = array<i64: 16, 32>}, {pipeline_mode = #tpu.pipeline_mode<synchronous>, transform_indices = @transform_1, window_bounds = array<i64: 32, 128>}, {pipeline_mode = #tpu.pipeline_mode<synchronous>, transform_indices = @transform_2, window_bounds = array<i64: 1, 128>}, {transform_indices = @transform_3, window_bounds = array<i64: 16, 128>}]} {
    %c0 = arith.constant 0 : index
    %c0_0 = arith.constant 0 : index
    %0 = vector.load %arg2[%c0, %c0_0] : memref<16x32xf32, #tpu.memory_space<vmem>>, vector<16x32xf32>
    %c0_1 = arith.constant 0 : index
    %c0_2 = arith.constant 0 : index
    %1 = vector.load %arg3[%c0_1, %c0_2] : memref<32x128xf32, #tpu.memory_space<vmem>>, vector<32x128xf32>
    %cst = arith.constant dense<0.000000e+00> : vector<16x128xf32>
    %2 = tpu.matmul %0, %1, %cst {dimension_numbers = #tpu.dot_dimension_numbers<[1], [0], [0], [1], [0, 0, 1, 1], [], []>} : vector<16x32xf32>, vector<32x128xf32>, vector<16x128xf32> -> vector<16x128xf32>
    %c0_3 = arith.constant 0 : index
    %c0_4 = arith.constant 0 : index
    %3 = vector.load %arg4[%c0_3, %c0_4] : memref<1x128xf32, #tpu.memory_space<vmem>>, vector<1x128xf32>
    %4 = vector.broadcast %3 : vector<1x128xf32> to vector<16x128xf32>
    %5 = arith.addf %2, %4 : vector<16x128xf32>
    %c0_5 = arith.constant 0 : index
    %c0_6 = arith.constant 0 : index
    %6 = vector.load %arg5[%c0_5, %c0_6] : memref<16x128xf32, #tpu.memory_space<vmem>>, vector<16x128xf32>
    tpu.vector_store %arg5[%c0_5, %c0_6], %5 {strides = array<i32>} : memref<16x128xf32, #tpu.memory_space<vmem>>, vector<16x128xf32>,
    return
  }
  func.func @transform_0(%arg0: i32, %arg1: i32) -> (i32, i32) {
    %c0_i32 = arith.constant 0 : i32
    %c0_i32_0 = arith.constant 0 : i32
    return %arg1, %c0_i32 : i32, i32
  }
  func.func @transform_1(%arg0: i32, %arg1: i32) -> (i32, i32) {
    %c0_i32 = arith.constant 0 : i32
    %c0_i32_0 = arith.constant 0 : i32
    return %c0_i32, %arg0 : i32, i32
  }
  func.func @transform_2(%arg0: i32, %arg1: i32) -> (i32, i32) {
    %c0_i32 = arith.constant 0 : i32
    %c0_i32_0 = arith.constant 0 : i32
    return %c0_i32, %arg0 : i32, i32
  }
  func.func @transform_3(%arg0: i32, %arg1: i32) -> (i32, i32) {
    %c0_i32 = arith.constant 0 : i32
    return %arg1, %arg0 : i32, i32
  }
}

module attributes {stable_mosaic.version = 11 : i64} {
  func.func @_proj_kernel(%arg0: i32, %arg1: i32, %arg2: memref<16x32xf32, #tpu.memory_space<vmem>>, %arg3: memref<32x128xf32, #tpu.memory_space<vmem>>, %arg4: memref<1x128xf32, #tpu.memory_space<vmem>>, %arg5: memref<16x128xf32, #tpu.memory_space<vmem>>) attributes {dimension_semantics = [#tpu.dimension_semantics<parallel>, #tpu.dimension_semantics<arbitrary>], iteration_bounds = array<i64: 1, 1>, scalar_prefetch = 0 : i64, scratch_operands = 0 : i64, tpu.core_type = #tpu.core_type<tc>, window_params = [{transform_indices = @transform_0, window_bounds = array<i64: 16, 32>}, {transform_indices = @transform_1, window_bounds = array<i64: 32, 128>}, {transform_indices = @transform_2, window_bounds = array<i64: 1, 128>}, {transform_indices = @transform_3, window_bounds = array<i64: 16, 128>}]} {
    %c0 = arith.constant 0 : index
    %c0_0 = arith.constant 0 : index
    %0 = vector.load %arg2[%c0, %c0_0] : memref<16x32xf32, #tpu.memory_space<vmem>>, vector<16x32xf32>
    %c0_1 = arith.constant 0 : index
    %c0_2 = arith.constant 0 : index
    %1 = vector.load %arg3[%c0_1, %c0_2] : memref<32x128xf32, #tpu.memory_space<vmem>>, vector<32x128xf32>
    %cst = arith.constant dense<0.000000e+00> : vector<16x128xf32>
    %2 = tpu.matmul %0, %1, %cst {dimension_numbers = #tpu.dot_dimension_numbers<[1], [0], [0], [1], [0, 0, 1, 1], [], []>} : vector<16x32xf32>, vector<32x128xf32>, vector<16x128xf32> -> vector<16x128xf32>
    %c0_3 = arith.constant 0 : index
    %c0_4 = arith.constant 0 : index
    %3 = vector.load %arg4[%c0_3, %c0_4] : memref<1x128xf32, #tpu.memory_space<vmem>>, vector<1x128xf32>
    %4 = vector.broadcast %3 : vector<1x128xf32> to vector<16x128xf32>
    %5 = arith.addf %2, %4 : vector<16x128xf32>
    %c0_5 = arith.constant 0 : index
    %c0_6 = arith.constant 0 : index
    %6 = vector.load %arg5[%c0_5, %c0_6] : memref<16x128xf32, #tpu.memory_space<vmem>>, vector<16x128xf32>
    tpu.vector_store %arg5[%c0_5, %c0_6], %5 {strides = array<i32>} : memref<16x128xf32, #tpu.memory_space<vmem>>, vector<16x128xf32>,
    return
  }
  func.func @transform_0(%arg0: i32, %arg1: i32) -> (i32, i32) {
    %c0_i32 = arith.constant 0 : i32
    %c0_i32_0 = arith.constant 0 : i32
    return %arg1, %c0_i32 : i32, i32
  }
  func.func @transform_1(%arg0: i32, %arg1: i32) -> (i32, i32) {
    %c0_i32 = arith.constant 0 : i32
    %c0_i32_0 = arith.constant 0 : i32
    return %c0_i32, %arg0 : i32, i32
  }
  func.func @transform_2(%arg0: i32, %arg1: i32) -> (i32, i32) {
    %c0_i32 = arith.constant 0 : i32
    %c0_i32_0 = arith.constant 0 : i32
    return %c0_i32, %arg0 : i32, i32
  }
  func.func @transform_3(%arg0: i32, %arg1: i32) -> (i32, i32) {
    %c0_i32 = arith.constant 0 : i32
    return %arg1, %arg0 : i32, i32
  }
}

</mosaic_0001>

<bundles_post_ra>
// kernel: tpu_custom_call.1
= control target key start
LH: loop header
LB: loop body
LE: loop exit
PB: predicated region body
PF: predicated region fallthrough
CT: control target
= control target key end

     0   :  { %8 = vsyncpa [#allocation3], 0  ;;  %s336_s0 = inlined_call_operand.hbm [shape: f32[16,32], index: 0, kind: input, shape index: {}]   ;;  %s337_s1 = inlined_call_operand.hbm [shape: f32[32,128], index: 1, kind: input, shape index: {}]   ;;  %s338_s2 = inlined_call_operand.vmem [shape: f32[1,128], index: 2, kind: input, shape index: {}]   ;;  %s339_s3 = inlined_call_operand.hbm [shape: f32[16,128], index: 3, kind: output, shape index: {}]  }
   0x1   :  { %9 = vsyncpa [#allocation6], 0 }
   0x2   :  { %10 = vsyncpa [#allocation4], 0  ;;  %s263_s12 = smov [#allocation2]   ;;  %s191_s16 = scalar_lea.hbm %s336_s0, 256 }
   0x3   :  { %s16_s13 = sshll.u32 %s263_s12, 4  ;;  %p192_p0 = scmp.ne.s32.totalorder %s336_s0, %s191_s16  ;;  %s17_s13 = int_to_ptr.vmem [resolvable:$true] %s16_s13 }
   0x4   :  { %p195_p1 = scmp.lt.u32.totalorder %s191_s16, %s336_s0 }
   0x6   :  { %p197_p2 = pnand %p195_p1, %p192_p0 }
   0x8   :  { %200 = shalt.err (!%p197_p2)
}
   0x9   :  { %s201_s21 = scalar_lea.vmem %s17_s13, 256  ;;  %p206_p4 = scmp.lt.s32.totalorder %s17_s13, %s17_s13 }
   0xa   :  { %p202_p3 = scmp.ne.s32.totalorder %s17_s13, %s201_s21  ;;  %p207_p5 = scmp.lt.s32.totalorder %s201_s21, %s201_s21 }
   0xc   :  { %p208_p6 = por %p207_p5, %p206_p4 }
   0xe   :  { %p209_p7 = pnand %p208_p6, %p202_p3 }
  0x10   :  { %212 = shalt.err (!%p209_p7)
}
  0x11   :  { %s264_s22 = smov 128   ;;  %s265_s23 = smov 8  }
  0x12   :  { %22 = dma.hbm_to_vmem [thread:$0]  %s336_s0, 256, %s17_s13, [#allocation3], %s264_s22, %s264_s22, %s265_s23  }
  0x13   :  { %s266_s26 = smov [#allocation5]   ;;  %s213_s30 = scalar_lea.hbm %s337_s1, 512 }
  0x14   :  { %s28_s27 = sshll.u32 %s266_s26, 4  ;;  %p214_p8 = scmp.ne.s32.totalorder %s337_s1, %s213_s30  ;;  %s29_s27 = int_to_ptr.vmem [resolvable:$true] %s28_s27 }
  0x15   :  { %p217_p9 = scmp.lt.u32.totalorder %s213_s30, %s337_s1 }
  0x17   :  { %p219_p10 = pnand %p217_p9, %p214_p8 }
  0x19   :  { %222 = shalt.err (!%p219_p10)
}
  0x1a   :  { %s223_s8 = scalar_lea.vmem %s29_s27, 512  ;;  %p228_p12 = scmp.lt.s32.totalorder %s29_s27, %s29_s27 }
  0x1b   :  { %p224_p11 = scmp.ne.s32.totalorder %s29_s27, %s223_s8  ;;  %p229_p13 = scmp.lt.s32.totalorder %s223_s8, %s223_s8 }
  0x1d   :  { %p230_p0 = por %p229_p13, %p228_p12 }
  0x1f   :  { %p231_p1 = pnand %p230_p0, %p224_p11 }
  0x21   :  { %234 = shalt.err (!%p231_p1)
}
  0x22   :  { %34 = dma.hbm_to_vmem [thread:$0]  %s337_s1, 512, %s29_s27, [#allocation6], %s264_s22, %s264_s22, %s265_s23  }
  0x23   :  { %257 = dma.done.wait [#allocation3], 256  }
  0x24   :  { %258 = vsyncadd [#allocation3], 4294967040 }
  0x25   :  { %259 = dma.done.wait [#allocation6], 512  }
  0x26   :  { %260 = vsyncadd [#allocation6], 4294966784  ;;  %vm56_vm0 = vcmask 261120   ;;  %v45_v0 = vld [vmem:[#allocation5] sm:$0xff]  ;;  %v46_v1 = vld [vmem:[#allocation5 + $0x8] sm:$0xff]  ;;  %s267_s11 = smov [#allocation7]  }
  0x27   :  { %v47_v2 = vld [vmem:[#allocation5 + $0x10] sm:$0xff]  ;;  %v178_v3 = vpack.c.bf16 %v46_v1, %v45_v0  ;;  %v48_v4 = vld [vmem:[#allocation5 + $0x18] sm:$0xff]  ;;  %s145_s12 = sshll.u32 %s267_s11, 4  ;;  %s146_s12 = int_to_ptr.vmem [resolvable:$true] %s145_s12 }
  0x28   :  { %v43_v5 = vld [vmem:[#allocation2] sm:$0xff]  ;;  %v182_v6 = vpack.c.bf16 %v48_v4, %v47_v2  ;;  %v44_v7 = vld [vmem:[#allocation2 + $0x8] sm:$0xff]  ;;  %s235_s13 = scalar_lea.vmem %s146_s12, 256  ;;  %p240_p3 = scmp.lt.s32.totalorder %s146_s12, %s146_s12 }
  0x29   :  { %175 = vmatprep.mubr.msk.f32.mxu0 %vm56_vm0, %v43_v5  ;;  %179 = vmatprep.subr.bf16.mxu0 %v178_v3  ;;  %v158_v8 = vld [vmem:[%s338_s2] ss:$0 sm:$0xff]  ;;  %p236_p2 = scmp.ne.s32.totalorder %s146_s12, %s235_s13  ;;  %p241_p4 = scmp.lt.s32.totalorder %s235_s13, %s235_s13 }
  0x2a   :  { %181 = vmatpush3.bf16.msra.mxu0 %v178_v3 }
  0x2b   :  { %183 = vmatprep.subr.bf16.mxu0 %v182_v6  ;;  %p242_p5 = por %p241_p4, %p240_p3 }
  0x2d   :  { %p243_p6 = pnand %p242_p5, %p236_p2 }
  0x2e   :  { %185 = vmatpush3.bf16.msra.mxu0 %v182_v6 }
  0x31   :  { %176 = vmatmul.mubr.msk.f32.vlgmr.msra.gmra.mrb[0].mxu0 %vm56_vm0, %v44_v7 }
 0x104   :  { %v177_v9 = vpop.f32.mrb[0].mxu0 }
 0x105   :  { %v135_v10 = vadd.f32 %v177_v9, %v158_v8  ;;  %v129_v11 = vpop.f32.mrb[1].mxu0 }
 0x106   :  { %v130_v12 = vadd.f32 %v158_v8, %v129_v11 }
 0x107   :  { %139 = vst [vmem:[#allocation7 + $0x8] sm:$0xff] %v135_v10 }
 0x108   :  { %138 = vst [vmem:[#allocation7] sm:$0xff] %v130_v12 }
 0x109   :  { %246 = shalt.err (!%p243_p6)
}
 0x10a   :  { %s247_s2 = scalar_lea.hbm %s339_s3, 256 }
 0x10b   :  { %p248_p7 = scmp.ne.s32.totalorder %s339_s3, %s247_s2  ;;  %p251_p8 = scmp.lt.u32.totalorder %s247_s2, %s339_s3 }
 0x10d   :  { %p253_p9 = pnand %p251_p8, %p248_p7 }
 0x10f   :  { %256 = shalt.err (!%p253_p9)
}
 0x110   :  { %151 = dma.vmem_to_hbm [thread:$0]  %s146_s12, 256, %s339_s3, [#allocation4], %s264_s22, %s264_s22, %s265_s23  }
 0x111   :  { %261 = dma.done.wait [#allocation4], 256  }
 0x112   :  { %262 = vsyncadd [#allocation4], 4294967040 }
 0x113   :  { %155 = vsyncpa [#allocation3], 1 }
 0x114   :  { %156 = vsyncpa [#allocation6], 1 }
 0x115   :  { %157 = vsyncpa [#allocation4], 1 }

// kernel: tpu_custom_call.1
= control target key start
LH: loop header
LB: loop body
LE: loop exit
PB: predicated region body
PF: predicated region fallthrough
CT: control target
= control target key end

     0   :  { %8 = vsyncpa [#allocation3], 0  ;;  %s336_s0 = inlined_call_operand.hbm [shape: f32[16,32], index: 0, kind: input, shape index: {}]   ;;  %s337_s1 = inlined_call_operand.hbm [shape: f32[32,128], index: 1, kind: input, shape index: {}]   ;;  %s338_s2 = inlined_call_operand.vmem [shape: f32[1,128], index: 2, kind: input, shape index: {}]   ;;  %s339_s3 = inlined_call_operand.hbm [shape: f32[16,128], index: 3, kind: output, shape index: {}]  }
   0x1   :  { %9 = vsyncpa [#allocation6], 0 }
   0x2   :  { %10 = vsyncpa [#allocation4], 0  ;;  %s263_s12 = smov [#allocation2]   ;;  %s191_s16 = scalar_lea.hbm %s336_s0, 256 }
   0x3   :  { %s16_s13 = sshll.u32 %s263_s12, 4  ;;  %p192_p0 = scmp.ne.s32.totalorder %s336_s0, %s191_s16  ;;  %s17_s13 = int_to_ptr.vmem [resolvable:$true] %s16_s13 }
   0x4   :  { %p195_p1 = scmp.lt.u32.totalorder %s191_s16, %s336_s0 }
   0x6   :  { %p197_p2 = pnand %p195_p1, %p192_p0 }
   0x8   :  { %200 = shalt.err (!%p197_p2)
}
   0x9   :  { %s201_s21 = scalar_lea.vmem %s17_s13, 256  ;;  %p206_p4 = scmp.lt.s32.totalorder %s17_s13, %s17_s13 }
   0xa   :  { %p202_p3 = scmp.ne.s32.totalorder %s17_s13, %s201_s21  ;;  %p207_p5 = scmp.lt.s32.totalorder %s201_s21, %s201_s21 }
   0xc   :  { %p208_p6 = por %p207_p5, %p206_p4 }
   0xe   :  { %p209_p7 = pnand %p208_p6, %p202_p3 }
  0x10   :  { %212 = shalt.err (!%p209_p7)
}
  0x11   :  { %s264_s22 = smov 128   ;;  %s265_s23 = smov 8  }
  0x12   :  { %22 = dma.hbm_to_vmem [thread:$0]  %s336_s0, 256, %s17_s13, [#allocation3], %s264_s22, %s264_s22, %s265_s23  }
  0x13   :  { %s266_s26 = smov [#allocation5]   ;;  %s213_s30 = scalar_lea.hbm %s337_s1, 512 }
  0x14   :  { %s28_s27 = sshll.u32 %s266_s26, 4  ;;  %p214_p8 = scmp.ne.s32.totalorder %s337_s1, %s213_s30  ;;  %s29_s27 = int_to_ptr.vmem [resolvable:$true] %s28_s27 }
  0x15   :  { %p217_p9 = scmp.lt.u32.totalorder %s213_s30, %s337_s1 }
  0x17   :  { %p219_p10 = pnand %p217_p9, %p214_p8 }
  0x19   :  { %222 = shalt.err (!%p219_p10)
}
  0x1a   :  { %s223_s8 = scalar_lea.vmem %s29_s27, 512  ;;  %p228_p12 = scmp.lt.s32.totalorder %s29_s27, %s29_s27 }
  0x1b   :  { %p224_p11 = scmp.ne.s32.totalorder %s29_s27, %s223_s8  ;;  %p229_p13 = scmp.lt.s32.totalorder %s223_s8, %s223_s8 }
  0x1d   :  { %p230_p0 = por %p229_p13, %p228_p12 }
  0x1f   :  { %p231_p1 = pnand %p230_p0, %p224_p11 }
  0x21   :  { %234 = shalt.err (!%p231_p1)
}
  0x22   :  { %34 = dma.hbm_to_vmem [thread:$0]  %s337_s1, 512, %s29_s27, [#allocation6], %s264_s22, %s264_s22, %s265_s23  }
  0x23   :  { %257 = dma.done.wait [#allocation3], 256  }
  0x24   :  { %258 = vsyncadd [#allocation3], 4294967040 }
  0x25   :  { %259 = dma.done.wait [#allocation6], 512  }
  0x26   :  { %260 = vsyncadd [#allocation6], 4294966784  ;;  %vm56_vm0 = vcmask 261120   ;;  %v45_v0 = vld [vmem:[#allocation5] sm:$0xff]  ;;  %v46_v1 = vld [vmem:[#allocation5 + $0x8] sm:$0xff]  ;;  %s267_s11 = smov [#allocation7]  }
  0x27   :  { %v47_v2 = vld [vmem:[#allocation5 + $0x10] sm:$0xff]  ;;  %v178_v3 = vpack.c.bf16 %v46_v1, %v45_v0  ;;  %v48_v4 = vld [vmem:[#allocation5 + $0x18] sm:$0xff]  ;;  %s145_s12 = sshll.u32 %s267_s11, 4  ;;  %s146_s12 = int_to_ptr.vmem [resolvable:$true] %s145_s12 }
  0x28   :  { %v43_v5 = vld [vmem:[#allocation2] sm:$0xff]  ;;  %v182_v6 = vpack.c.bf16 %v48_v4, %v47_v2  ;;  %v44_v7 = vld [vmem:[#allocation2 + $0x8] sm:$0xff]  ;;  %s235_s13 = scalar_lea.vmem %s146_s12, 256  ;;  %p240_p3 = scmp.lt.s32.totalorder %s146_s12, %s146_s12 }
  0x29   :  { %175 = vmatprep.mubr.msk.f32.mxu0 %vm56_vm0, %v43_v5  ;;  %179 = vmatprep.subr.bf16.mxu0 %v178_v3  ;;  %v158_v8 = vld [vmem:[%s338_s2] ss:$0 sm:$0xff]  ;;  %p236_p2 = scmp.ne.s32.totalorder %s146_s12, %s235_s13  ;;  %p241_p4 = scmp.lt.s32.totalorder %s235_s13, %s235_s13 }
  0x2a   :  { %181 = vmatpush3.bf16.msra.mxu0 %v178_v3 }
  0x2b   :  { %183 = vmatprep.subr.bf16.mxu0 %v182_v6  ;;  %p242_p5 = por %p241_p4, %p240_p3 }
  0x2d   :  { %p243_p6 = pnand %p242_p5, %p236_p2 }
  0x2e   :  { %185 = vmatpush3.bf16.msra.mxu0 %v182_v6 }
  0x31   :  { %176 = vmatmul.mubr.msk.f32.vlgmr.msra.gmra.mrb[0].mxu0 %vm56_vm0, %v44_v7 }
 0x104   :  { %v177_v9 = vpop.f32.mrb[0].mxu0 }
 0x105   :  { %v135_v10 = vadd.f32 %v177_v9, %v158_v8  ;;  %v129_v11 = vpop.f32.mrb[1].mxu0 }
 0x106   :  { %v130_v12 = vadd.f32 %v158_v8, %v129_v11 }
 0x107   :  { %139 = vst [vmem:[#allocation7 + $0x8] sm:$0xff] %v135_v10 }
 0x108   :  { %138 = vst [vmem:[#allocation7] sm:$0xff] %v130_v12 }
 0x109   :  { %246 = shalt.err (!%p243_p6)
}
 0x10a   :  { %s247_s2 = scalar_lea.hbm %s339_s3, 256 }
 0x10b   :  { %p248_p7 = scmp.ne.s32.totalorder %s339_s3, %s247_s2  ;;  %p251_p8 = scmp.lt.u32.totalorder %s247_s2, %s339_s3 }
 0x10d   :  { %p253_p9 = pnand %p251_p8, %p248_p7 }
 0x10f   :  { %256 = shalt.err (!%p253_p9)
}
 0x110   :  { %151 = dma.vmem_to_hbm [thread:$0]  %s146_s12, 256, %s339_s3, [#allocation4], %s264_s22, %s264_s22, %s265_s23  }
 0x111   :  { %261 = dma.done.wait [#allocation4], 256  }
 0x112   :  { %262 = vsyncadd [#allocation4], 4294967040 }
 0x113   :  { %155 = vsyncpa [#allocation3], 1 }
 0x114   :  { %156 = vsyncpa [#allocation6], 1 }
 0x115   :  { %157 = vsyncpa [#allocation4], 1 }

</bundles_post_ra>
